<compile_context>
chip_gen: v5e
topology: v5e:2x2
jax: 0.10.0
libtpu: 0.0.40
codegen_flags: <defaults>
</compile_context>

<pallas_src>
import functools

import jax
import jax.numpy as jnp
from jax.experimental import pallas as pl
from jax.experimental.pallas import tpu as pltpu

LANE = 128
DEFAULT_TM = 512  # rows (sublanes) per grid step; sweep 256-1024 on real sizes


def _mp_core(x, store, *, v_threshold, presim_len, sim_len):
    """Shared elementwise MPLayer math (IF neuron, soft reset, threshold 1.0).

    `x` is a float32 array; `store(t, spike_scaled)` is invoked once per
    simulation step with the spike array already scaled by v_threshold.
    """
    x = x.astype(jnp.float32)
    in_val = x * jnp.float32(1.0 / float(v_threshold))

    # Hoisted constant vectors — keep broadcasts out of the time loops.
    zeros = jnp.zeros_like(x)
    big_pos = jnp.full_like(x, 1000.0)
    big_neg = jnp.full_like(x, -1000.0)
    huge = jnp.full_like(x, 1e30)

    # t == 0 init: neuron.reset(); neuron(0.5) -> v = 0.5 (no spike, soft reset)
    v = jnp.full_like(x, 0.5)
    init_mem = v
    snn_rate = zeros

    # placeholders (only meaningful if presim_len > 0)
    mlow = mlow2 = mhigh2 = mlow3 = mhigh3 = zeros

    # ---- opt_epoch 0: mem_seq / mem_seq2 are separate lists ----
    mem_min = huge
    mem2_max = -huge
    for _ in range(presim_len):
        v = v + in_val
        ge = v >= 1.0
        s = jnp.where(ge, 1.0, 0.0)
        v = v - s                              # soft reset (v_reset=None)
        snn_rate = snn_rate + s
        a = jnp.where(ge, v + 1.0, big_pos)    # mem = v + 1.0 where spiked
        b = jnp.where(ge, big_neg, v)
        mem_min = jnp.minimum(mem_min, a)
        mem2_max = jnp.maximum(mem2_max, b)
    if presim_len > 0:
        v0 = v
        mlow = jnp.where(v0 < 0.0, jnp.where(snn_rate > 0.001, 1.0, 0.0), 0.0)
        mlow2 = jnp.where(v0 < -1.0, jnp.where(snn_rate > 1.0, 1.0, 0.0), 0.0)
        mhigh2 = jnp.where(v0 >= 2.0, 1.0, 0.0)
        mlow3 = jnp.where(v0 < -2.0, jnp.where(snn_rate > 2.0, 1.0, 0.0), 0.0)
        mhigh3 = jnp.where(v0 >= 3.0, 1.0, 0.0)
        val = jnp.maximum(mem_min - 0.999, 1.0)    # where(x>1, x, 1)
        val2 = jnp.maximum(1.001 - mem2_max, 1.0)
        mem_init = init_mem - mlow * val
        mem_init = jnp.where(v0 >= 1.0, 0.5 + val2, mem_init)
        v = mem_init
        init_mem = mem_init

    # ---- opt_epochs 1 and 2: mem_seq and mem_seq2 alias the SAME list, so
    # the min/max are taken over the union of both sequences (faithful port).
    # snn_rate/mem bookkeeping is unused here and therefore skipped.
    for epoch in (1, 2):
        cmin = huge
        cmax = -huge
        for _ in range(presim_len):
            v = v + in_val
            ge = v >= 1.0
            v = jnp.where(ge, v - 1.0, v)
            a = jnp.where(ge, v + 1.0, big_pos)
            b = jnp.where(ge, big_neg, v)
            cmin = jnp.minimum(cmin, jnp.minimum(a, b))
            cmax = jnp.maximum(cmax, jnp.maximum(a, b))
        if presim_len > 0:
            val = jnp.maximum(cmin - 0.999, 1.0)
            val2 = jnp.maximum(1.001 - cmax, 1.0)
            if epoch == 1:
                mem_init = init_mem - mlow2 * val + mhigh2 * val2
            else:
                mem_init = init_mem - mlow3 * val + mhigh3 * val2
            v = mem_init
            init_mem = mem_init

    # ---- simulation loop: stream spikes straight to the consumer ----
    vth = jnp.float32(v_threshold)
    for t in range(sim_len):
        v = v + in_val
        ge = v >= 1.0
        store(t, jnp.where(ge, vth, 0.0))      # s * v_threshold
        v = jnp.where(ge, v - 1.0, v)


def _mp_kernel(x_ref, out_ref, *, v_threshold, presim_len, sim_len):
    def store(t, spike):
        out_ref[t, :, :] = spike.astype(out_ref.dtype)

    _mp_core(
        x_ref[...], store,
        v_threshold=v_threshold, presim_len=presim_len, sim_len=sim_len,
    )


def mp_layer_forward(x, *, v_threshold=8.0, presim_len=4, sim_len=8,
                     tm=DEFAULT_TM, out_dtype=None):
    """x: (B, C, H, W), B <= batchsize path.  Returns (sim_len*B, C, H, W).

    Output values are exactly 0 or v_threshold; bf16 output is used only when
    that is lossless, otherwise float32.
    """
    B, C, H, W = x.shape
    n = B * C * H * W

    if out_dtype is None:
        thr_bf16 = float(jnp.asarray(v_threshold, dtype=jnp.bfloat16))
        out_dtype = jnp.bfloat16 if thr_bf16 == float(v_threshold) else jnp.float32

    x_flat = jnp.ravel(x).astype(jnp.float32)
    m_rows = pl.cdiv(n, LANE)
    # Shrink tile for tiny inputs (keep a multiple of 8 sublanes); at TM=512
    # each grid step is ~256 KiB in (f32) / ~1 MiB out (bf16) — well under the
    # scoped-VMEM default with double buffering on v5e/v6e/v7x.
    tm = min(tm, ((m_rows + 7) // 8) * 8)
    m = pl.cdiv(m_rows, tm) * tm
    pad = m * LANE - n
    if pad:
        x_flat = jnp.pad(x_flat, (0, pad))
    x2 = x_flat.reshape(m, LANE)

    nelem = m * LANE
    out_itemsize = jnp.dtype(out_dtype).itemsize
    ops_per_elem = 3 * presim_len * 8 + sim_len * 5 + 40
    cost = pl.CostEstimate(
        flops=ops_per_elem * nelem,
        transcendentals=0,
        bytes_accessed=nelem * 4 + sim_len * nelem * out_itemsize,
    )

    kernel = functools.partial(
        _mp_kernel,
        v_threshold=float(v_threshold),
        presim_len=presim_len,
        sim_len=sim_len,
    )

    out = pl.pallas_call(
        kernel,
        out_shape=jax.ShapeDtypeStruct((sim_len, m, LANE), out_dtype),
        grid=(m // tm,),
        in_specs=[pl.BlockSpec((tm, LANE), lambda i: (i, 0))],
        out_specs=pl.BlockSpec((sim_len, tm, LANE), lambda i: (0, i, 0)),
        compiler_params=pltpu.CompilerParams(
            dimension_semantics=("parallel",)),
        cost_estimate=cost,
    )(x2)

    out = out.reshape(sim_len, m * LANE)[:, :n].reshape(sim_len, B, C, H, W)
    return out.reshape(sim_len * B, C, H, W)


def mp_layer_reference(x, *, v_threshold=8.0, presim_len=4, sim_len=8):
    """Pure-JAX reference (f32), same math as the kernel."""
    B, C, H, W = x.shape
    spikes = [None] * sim_len

    def store(t, s):
        spikes[t] = s

    _mp_core(
        x.astype(jnp.float32), store,
        v_threshold=v_threshold, presim_len=presim_len, sim_len=sim_len,
    )
    out = jnp.stack(spikes, axis=0)
    return out.reshape(sim_len * B, C, H, W)


if __name__ == "__main__":
    key = jax.random.PRNGKey(0)
    B, C, H, W = 2, 4, 16, 16
    v_threshold = 8.0
    presim_len = 4
    sim_len = 8

    x = jax.random.normal(key, (B, C, H, W), dtype=jnp.float32) * 6.0

    out = mp_layer_forward(
        x, v_threshold=v_threshold, presim_len=presim_len, sim_len=sim_len
    )
    out = jax.block_until_ready(out)

    ref = jax.block_until_ready(
        mp_layer_reference(
            x, v_threshold=v_threshold, presim_len=presim_len, sim_len=sim_len
        )
    )

    assert out.shape == (sim_len * B, C, H, W), out.shape
    # spikes are exactly 0 or v_threshold, so the bf16 round-trip is lossless
    err = float(jnp.max(jnp.abs(out.astype(jnp.float32) - ref)))
    assert err < 1e-5, err
    print("KERNEL_OK")
</pallas_src>

<mosaic_0001>
module attributes {stable_mosaic.version = 11 : i64} {
  func.func @_mp_kernel(%arg0: i32, %arg1: memref<16x128xf32, #tpu.memory_space<vmem>>, %arg2: memref<8x16x128xbf16, #tpu.memory_space<vmem>>) attributes {dimension_semantics = [#tpu.dimension_semantics<parallel>], iteration_bounds = array<i64: 1>, scalar_prefetch = 0 : i64, scratch_operands = 0 : i64, tpu.core_type = #tpu.core_type<tc>, window_params = [{transform_indices = @transform_0, window_bounds = array<i64: 16, 128>}, {transform_indices = @transform_1, window_bounds = array<i64: 8, 16, 128>}]} {
    %c0 = arith.constant 0 : index
    %c0_0 = arith.constant 0 : index
    %0 = vector.load %arg1[%c0, %c0_0] : memref<16x128xf32, #tpu.memory_space<vmem>>, vector<16x128xf32>
    %cst = arith.constant 1.250000e-01 : f32
    %1 = vector.broadcast %cst : f32 to vector<16x128xf32>
    %2 = arith.mulf %0, %1 : vector<16x128xf32>
    %cst_1 = arith.constant 0.000000e+00 : f32
    %3 = vector.broadcast %cst_1 : f32 to vector<16x128xf32>
    %cst_2 = arith.constant 1.000000e+03 : f32
    %4 = vector.broadcast %cst_2 : f32 to vector<16x128xf32>
    %cst_3 = arith.constant -1.000000e+03 : f32
    %5 = vector.broadcast %cst_3 : f32 to vector<16x128xf32>
    %cst_4 = arith.constant 1.000000e+30 : f32
    %6 = vector.broadcast %cst_4 : f32 to vector<16x128xf32>
    %cst_5 = arith.constant 5.000000e-01 : f32
    %7 = vector.broadcast %cst_5 : f32 to vector<16x128xf32>
    %cst_6 = arith.constant 0.000000e+00 : f32
    %8 = vector.broadcast %cst_6 : f32 to vector<16x128xf32>
    %9 = arith.subf %8, %6 : vector<16x128xf32>
    %10 = arith.addf %7, %2 : vector<16x128xf32>
    %cst_7 = arith.constant 1.000000e+00 : f32
    %11 = vector.broadcast %cst_7 : f32 to vector<16x128xf32>
    %12 = arith.cmpf oge, %10, %11 : vector<16x128xf32>
    %cst_8 = arith.constant 1.000000e+00 : f32
    %cst_9 = arith.constant 0.000000e+00 : f32
    %13 = vector.broadcast %cst_8 : f32 to vector<16x128xf32>
    %14 = vector.broadcast %cst_9 : f32 to vector<16x128xf32>
    %15 = arith.select %12, %13, %14 : vector<16x128xi1>, vector<16x128xf32>
    %16 = arith.subf %10, %15 : vector<16x128xf32>
    %17 = arith.addf %3, %15 : vector<16x128xf32>
    %cst_10 = arith.constant 1.000000e+00 : f32
    %18 = vector.broadcast %cst_10 : f32 to vector<16x128xf32>
    %19 = arith.addf %16, %18 : vector<16x128xf32>
    %20 = arith.select %12, %19, %4 : vector<16x128xi1>, vector<16x128xf32>
    %21 = arith.select %12, %5, %16 : vector<16x128xi1>, vector<16x128xf32>
    %22 = arith.minimumf %6, %20 : vector<16x128xf32>
    %23 = arith.maximumf %9, %21 : vector<16x128xf32>
    %24 = arith.addf %16, %2 : vector<16x128xf32>
    %cst_11 = arith.constant 1.000000e+00 : f32
    %25 = vector.broadcast %cst_11 : f32 to vector<16x128xf32>
    %26 = arith.cmpf oge, %24, %25 : vector<16x128xf32>
    %cst_12 = arith.constant 1.000000e+00 : f32
    %cst_13 = arith.constant 0.000000e+00 : f32
    %27 = vector.broadcast %cst_12 : f32 to vector<16x128xf32>
    %28 = vector.broadcast %cst_13 : f32 to vector<16x128xf32>
    %29 = arith.select %26, %27, %28 : vector<16x128xi1>, vector<16x128xf32>
    %30 = arith.subf %24, %29 : vector<16x128xf32>
    %31 = arith.addf %17, %29 : vector<16x128xf32>
    %cst_14 = arith.constant 1.000000e+00 : f32
    %32 = vector.broadcast %cst_14 : f32 to vector<16x128xf32>
    %33 = arith.addf %30, %32 : vector<16x128xf32>
    %34 = arith.select %26, %33, %4 : vector<16x128xi1>, vector<16x128xf32>
    %35 = arith.select %26, %5, %30 : vector<16x128xi1>, vector<16x128xf32>
    %36 = arith.minimumf %22, %34 : vector<16x128xf32>
    %37 = arith.maximumf %23, %35 : vector<16x128xf32>
    %38 = arith.addf %30, %2 : vector<16x128xf32>
    %cst_15 = arith.constant 1.000000e+00 : f32
    %39 = vector.broadcast %cst_15 : f32 to vector<16x128xf32>
    %40 = arith.cmpf oge, %38, %39 : vector<16x128xf32>
    %cst_16 = arith.constant 1.000000e+00 : f32
    %cst_17 = arith.constant 0.000000e+00 : f32
    %41 = vector.broadcast %cst_16 : f32 to vector<16x128xf32>
    %42 = vector.broadcast %cst_17 : f32 to vector<16x128xf32>
    %43 = arith.select %40, %41, %42 : vector<16x128xi1>, vector<16x128xf32>
    %44 = arith.subf %38, %43 : vector<16x128xf32>
    %45 = arith.addf %31, %43 : vector<16x128xf32>
    %cst_18 = arith.constant 1.000000e+00 : f32
    %46 = vector.broadcast %cst_18 : f32 to vector<16x128xf32>
    %47 = arith.addf %44, %46 : vector<16x128xf32>
    %48 = arith.select %40, %47, %4 : vector<16x128xi1>, vector<16x128xf32>
    %49 = arith.select %40, %5, %44 : vector<16x128xi1>, vector<16x128xf32>
    %50 = arith.minimumf %36, %48 : vector<16x128xf32>
    %51 = arith.maximumf %37, %49 : vector<16x128xf32>
    %52 = arith.addf %44, %2 : vector<16x128xf32>
    %cst_19 = arith.constant 1.000000e+00 : f32
    %53 = vector.broadcast %cst_19 : f32 to vector<16x128xf32>
    %54 = arith.cmpf oge, %52, %53 : vector<16x128xf32>
    %cst_20 = arith.constant 1.000000e+00 : f32
    %cst_21 = arith.constant 0.000000e+00 : f32
    %55 = vector.broadcast %cst_20 : f32 to vector<16x128xf32>
    %56 = vector.broadcast %cst_21 : f32 to vector<16x128xf32>
    %57 = arith.select %54, %55, %56 : vector<16x128xi1>, vector<16x128xf32>
    %58 = arith.subf %52, %57 : vector<16x128xf32>
    %59 = arith.addf %45, %57 : vector<16x128xf32>
    %cst_22 = arith.constant 1.000000e+00 : f32
    %60 = vector.broadcast %cst_22 : f32 to vector<16x128xf32>
    %61 = arith.addf %58, %60 : vector<16x128xf32>
    %62 = arith.select %54, %61, %4 : vector<16x128xi1>, vector<16x128xf32>
    %63 = arith.select %54, %5, %58 : vector<16x128xi1>, vector<16x128xf32>
    %64 = arith.minimumf %50, %62 : vector<16x128xf32>
    %65 = arith.maximumf %51, %63 : vector<16x128xf32>
    %cst_23 = arith.constant 0.000000e+00 : f32
    %66 = vector.broadcast %cst_23 : f32 to vector<16x128xf32>
    %67 = arith.cmpf olt, %58, %66 : vector<16x128xf32>
    %cst_24 = arith.constant 1.000000e-03 : f32
    %68 = vector.broadcast %cst_24 : f32 to vector<16x128xf32>
    %69 = arith.cmpf ogt, %59, %68 : vector<16x128xf32>
    %cst_25 = arith.constant 1.000000e+00 : f32
    %cst_26 = arith.constant 0.000000e+00 : f32
    %70 = vector.broadcast %cst_25 : f32 to vector<16x128xf32>
    %71 = vector.broadcast %cst_26 : f32 to vector<16x128xf32>
    %72 = arith.select %69, %70, %71 : vector<16x128xi1>, vector<16x128xf32>
    %cst_27 = arith.constant 0.000000e+00 : f32
    %73 = vector.broadcast %cst_27 : f32 to vector<16x128xf32>
    %74 = arith.select %67, %72, %73 : vector<16x128xi1>, vector<16x128xf32>
    %cst_28 = arith.constant -1.000000e+00 : f32
    %75 = vector.broadcast %cst_28 : f32 to vector<16x128xf32>
    %76 = arith.cmpf olt, %58, %75 : vector<16x128xf32>
    %cst_29 = arith.constant 1.000000e+00 : f32
    %77 = vector.broadcast %cst_29 : f32 to vector<16x128xf32>
    %78 = arith.cmpf ogt, %59, %77 : vector<16x128xf32>
    %cst_30 = arith.constant 1.000000e+00 : f32
    %cst_31 = arith.constant 0.000000e+00 : f32
    %79 = vector.broadcast %cst_30 : f32 to vector<16x128xf32>
    %80 = vector.broadcast %cst_31 : f32 to vector<16x128xf32>
    %81 = arith.select %78, %79, %80 : vector<16x128xi1>, vector<16x128xf32>
    %cst_32 = arith.constant 0.000000e+00 : f32
    %82 = vector.broadcast %cst_32 : f32 to vector<16x128xf32>
    %83 = arith.select %76, %81, %82 : vector<16x128xi1>, vector<16x128xf32>
    %cst_33 = arith.constant 2.000000e+00 : f32
    %84 = vector.broadcast %cst_33 : f32 to vector<16x128xf32>
    %85 = arith.cmpf oge, %58, %84 : vector<16x128xf32>
    %cst_34 = arith.constant 1.000000e+00 : f32
    %cst_35 = arith.constant 0.000000e+00 : f32
    %86 = vector.broadcast %cst_34 : f32 to vector<16x128xf32>
    %87 = vector.broadcast %cst_35 : f32 to vector<16x128xf32>
    %88 = arith.select %85, %86, %87 : vector<16x128xi1>, vector<16x128xf32>
    %cst_36 = arith.constant -2.000000e+00 : f32
    %89 = vector.broadcast %cst_36 : f32 to vector<16x128xf32>
    %90 = arith.cmpf olt, %58, %89 : vector<16x128xf32>
    %cst_37 = arith.constant 2.000000e+00 : f32
    %91 = vector.broadcast %cst_37 : f32 to vector<16x128xf32>
    %92 = arith.cmpf ogt, %59, %91 : vector<16x128xf32>
    %cst_38 = arith.constant 1.000000e+00 : f32
    %cst_39 = arith.constant 0.000000e+00 : f32
    %93 = vector.broadcast %cst_38 : f32 to vector<16x128xf32>
    %94 = vector.broadcast %cst_39 : f32 to vector<16x128xf32>
    %95 = arith.select %92, %93, %94 : vector<16x128xi1>, vector<16x128xf32>
    %cst_40 = arith.constant 0.000000e+00 : f32
    %96 = vector.broadcast %cst_40 : f32 to vector<16x128xf32>
    %97 = arith.select %90, %95, %96 : vector<16x128xi1>, vector<16x128xf32>
    %cst_41 = arith.constant 3.000000e+00 : f32
    %98 = vector.broadcast %cst_41 : f32 to vector<16x128xf32>
    %99 = arith.cmpf oge, %58, %98 : vector<16x128xf32>
    %cst_42 = arith.constant 1.000000e+00 : f32
    %cst_43 = arith.constant 0.000000e+00 : f32
    %100 = vector.broadcast %cst_42 : f32 to vector<16x128xf32>
    %101 = vector.broadcast %cst_43 : f32 to vector<16x128xf32>
    %102 = arith.select %99, %100, %101 : vector<16x128xi1>, vector<16x128xf32>
    %cst_44 = arith.constant 9.990000e-01 : f32
    %103 = vector.broadcast %cst_44 : f32 to vector<16x128xf32>
    %104 = arith.subf %64, %103 : vector<16x128xf32>
    %cst_45 = arith.constant 1.000000e+00 : f32
    %105 = vector.broadcast %cst_45 : f32 to vector<16x128xf32>
    %106 = arith.maximumf %104, %105 : vector<16x128xf32>
    %cst_46 = arith.constant 1.001000e+00 : f32
    %107 = vector.broadcast %cst_46 : f32 to vector<16x128xf32>
    %108 = arith.subf %107, %65 : vector<16x128xf32>
    %cst_47 = arith.constant 1.000000e+00 : f32
    %109 = vector.broadcast %cst_47 : f32 to vector<16x128xf32>
    %110 = arith.maximumf %108, %109 : vector<16x128xf32>
    %111 = arith.mulf %74, %106 : vector<16x128xf32>
    %112 = arith.subf %7, %111 : vector<16x128xf32>
    %cst_48 = arith.constant 1.000000e+00 : f32
    %113 = vector.broadcast %cst_48 : f32 to vector<16x128xf32>
    %114 = arith.cmpf oge, %58, %113 : vector<16x128xf32>
    %cst_49 = arith.constant 5.000000e-01 : f32
    %115 = vector.broadcast %cst_49 : f32 to vector<16x128xf32>
    %116 = arith.addf %115, %110 : vector<16x128xf32>
    %117 = arith.select %114, %116, %112 : vector<16x128xi1>, vector<16x128xf32>
    %cst_50 = arith.constant 0.000000e+00 : f32
    %118 = vector.broadcast %cst_50 : f32 to vector<16x128xf32>
    %119 = arith.subf %118, %6 : vector<16x128xf32>
    %120 = arith.addf %117, %2 : vector<16x128xf32>
    %cst_51 = arith.constant 1.000000e+00 : f32
    %121 = vector.broadcast %cst_51 : f32 to vector<16x128xf32>
    %122 = arith.cmpf oge, %120, %121 : vector<16x128xf32>
    %cst_52 = arith.constant 1.000000e+00 : f32
    %123 = vector.broadcast %cst_52 : f32 to vector<16x128xf32>
    %124 = arith.subf %120, %123 : vector<16x128xf32>
    %125 = arith.select %122, %124, %120 : vector<16x128xi1>, vector<16x128xf32>
    %cst_53 = arith.constant 1.000000e+00 : f32
    %126 = vector.broadcast %cst_53 : f32 to vector<16x128xf32>
    %127 = arith.addf %125, %126 : vector<16x128xf32>
    %128 = arith.select %122, %127, %4 : vector<16x128xi1>, vector<16x128xf32>
    %129 = arith.select %122, %5, %125 : vector<16x128xi1>, vector<16x128xf32>
    %130 = arith.minimumf %128, %129 : vector<16x128xf32>
    %131 = arith.minimumf %6, %130 : vector<16x128xf32>
    %132 = arith.maximumf %128, %129 : vector<16x128xf32>
    %133 = arith.maximumf %119, %132 : vector<16x128xf32>
    %134 = arith.addf %125, %2 : vector<16x128xf32>
    %cst_54 = arith.constant 1.000000e+00 : f32
    %135 = vector.broadcast %cst_54 : f32 to vector<16x128xf32>
    %136 = arith.cmpf oge, %134, %135 : vector<16x128xf32>
    %cst_55 = arith.constant 1.000000e+00 : f32
    %137 = vector.broadcast %cst_55 : f32 to vector<16x128xf32>
    %138 = arith.subf %134, %137 : vector<16x128xf32>
    %139 = arith.select %136, %138, %134 : vector<16x128xi1>, vector<16x128xf32>
    %cst_56 = arith.constant 1.000000e+00 : f32
    %140 = vector.broadcast %cst_56 : f32 to vector<16x128xf32>
    %141 = arith.addf %139, %140 : vector<16x128xf32>
    %142 = arith.select %136, %141, %4 : vector<16x128xi1>, vector<16x128xf32>
    %143 = arith.select %136, %5, %139 : vector<16x128xi1>, vector<16x128xf32>
    %144 = arith.minimumf %142, %143 : vector<16x128xf32>
    %145 = arith.minimumf %131, %144 : vector<16x128xf32>
    %146 = arith.maximumf %142, %143 : vector<16x128xf32>
    %147 = arith.maximumf %133, %146 : vector<16x128xf32>
    %148 = arith.addf %139, %2 : vector<16x128xf32>
    %cst_57 = arith.constant 1.000000e+00 : f32
    %149 = vector.broadcast %cst_57 : f32 to vector<16x128xf32>
    %150 = arith.cmpf oge, %148, %149 : vector<16x128xf32>
    %cst_58 = arith.constant 1.000000e+00 : f32
    %151 = vector.broadcast %cst_58 : f32 to vector<16x128xf32>
    %152 = arith.subf %148, %151 : vector<16x128xf32>
    %153 = arith.select %150, %152, %148 : vector<16x128xi1>, vector<16x128xf32>
    %cst_59 = arith.constant 1.000000e+00 : f32
    %154 = vector.broadcast %cst_59 : f32 to vector<16x128xf32>
    %155 = arith.addf %153, %154 : vector<16x128xf32>
    %156 = arith.select %150, %155, %4 : vector<16x128xi1>, vector<16x128xf32>
    %157 = arith.select %150, %5, %153 : vector<16x128xi1>, vector<16x128xf32>
    %158 = arith.minimumf %156, %157 : vector<16x128xf32>
    %159 = arith.minimumf %145, %158 : vector<16x128xf32>
    %160 = arith.maximumf %156, %157 : vector<16x128xf32>
    %161 = arith.maximumf %147, %160 : vector<16x128xf32>
    %162 = arith.addf %153, %2 : vector<16x128xf32>
    %cst_60 = arith.constant 1.000000e+00 : f32
    %163 = vector.broadcast %cst_60 : f32 to vector<16x128xf32>
    %164 = arith.cmpf oge, %162, %163 : vector<16x128xf32>
    %cst_61 = arith.constant 1.000000e+00 : f32
    %165 = vector.broadcast %cst_61 : f32 to vector<16x128xf32>
    %166 = arith.subf %162, %165 : vector<16x128xf32>
    %167 = arith.select %164, %166, %162 : vector<16x128xi1>, vector<16x128xf32>
    %cst_62 = arith.constant 1.000000e+00 : f32
    %168 = vector.broadcast %cst_62 : f32 to vector<16x128xf32>
    %169 = arith.addf %167, %168 : vector<16x128xf32>
    %170 = arith.select %164, %169, %4 : vector<16x128xi1>, vector<16x128xf32>
    %171 = arith.select %164, %5, %167 : vector<16x128xi1>, vector<16x128xf32>
    %172 = arith.minimumf %170, %171 : vector<16x128xf32>
    %173 = arith.minimumf %159, %172 : vector<16x128xf32>
    %174 = arith.maximumf %170, %171 : vector<16x128xf32>
    %175 = arith.maximumf %161, %174 : vector<16x128xf32>
    %cst_63 = arith.constant 9.990000e-01 : f32
    %176 = vector.broadcast %cst_63 : f32 to vector<16x128xf32>
    %177 = arith.subf %173, %176 : vector<16x128xf32>
    %cst_64 = arith.constant 1.000000e+00 : f32
    %178 = vector.broadcast %cst_64 : f32 to vector<16x128xf32>
    %179 = arith.maximumf %177, %178 : vector<16x128xf32>
    %cst_65 = arith.constant 1.001000e+00 : f32
    %180 = vector.broadcast %cst_65 : f32 to vector<16x128xf32>
    %181 = arith.subf %180, %175 : vector<16x128xf32>
    %cst_66 = arith.constant 1.000000e+00 : f32
    %182 = vector.broadcast %cst_66 : f32 to vector<16x128xf32>
    %183 = arith.maximumf %181, %182 : vector<16x128xf32>
    %184 = arith.mulf %83, %179 : vector<16x128xf32>
    %185 = arith.subf %117, %184 : vector<16x128xf32>
    %186 = arith.mulf %88, %183 : vector<16x128xf32>
    %187 = arith.addf %185, %186 : vector<16x128xf32>
    %cst_67 = arith.constant 0.000000e+00 : f32
    %188 = vector.broadcast %cst_67 : f32 to vector<16x128xf32>
    %189 = arith.subf %188, %6 : vector<16x128xf32>
    %190 = arith.addf %187, %2 : vector<16x128xf32>
    %cst_68 = arith.constant 1.000000e+00 : f32
    %191 = vector.broadcast %cst_68 : f32 to vector<16x128xf32>
    %192 = arith.cmpf oge, %190, %191 : vector<16x128xf32>
    %cst_69 = arith.constant 1.000000e+00 : f32
    %193 = vector.broadcast %cst_69 : f32 to vector<16x128xf32>
    %194 = arith.subf %190, %193 : vector<16x128xf32>
    %195 = arith.select %192, %194, %190 : vector<16x128xi1>, vector<16x128xf32>
    %cst_70 = arith.constant 1.000000e+00 : f32
    %196 = vector.broadcast %cst_70 : f32 to vector<16x128xf32>
    %197 = arith.addf %195, %196 : vector<16x128xf32>
    %198 = arith.select %192, %197, %4 : vector<16x128xi1>, vector<16x128xf32>
    %199 = arith.select %192, %5, %195 : vector<16x128xi1>, vector<16x128xf32>
    %200 = arith.minimumf %198, %199 : vector<16x128xf32>
    %201 = arith.minimumf %6, %200 : vector<16x128xf32>
    %202 = arith.maximumf %198, %199 : vector<16x128xf32>
    %203 = arith.maximumf %189, %202 : vector<16x128xf32>
    %204 = arith.addf %195, %2 : vector<16x128xf32>
    %cst_71 = arith.constant 1.000000e+00 : f32
    %205 = vector.broadcast %cst_71 : f32 to vector<16x128xf32>
    %206 = arith.cmpf oge, %204, %205 : vector<16x128xf32>
    %cst_72 = arith.constant 1.000000e+00 : f32
    %207 = vector.broadcast %cst_72 : f32 to vector<16x128xf32>
    %208 = arith.subf %204, %207 : vector<16x128xf32>
    %209 = arith.select %206, %208, %204 : vector<16x128xi1>, vector<16x128xf32>
    %cst_73 = arith.constant 1.000000e+00 : f32
    %210 = vector.broadcast %cst_73 : f32 to vector<16x128xf32>
    %211 = arith.addf %209, %210 : vector<16x128xf32>
    %212 = arith.select %206, %211, %4 : vector<16x128xi1>, vector<16x128xf32>
    %213 = arith.select %206, %5, %209 : vector<16x128xi1>, vector<16x128xf32>
    %214 = arith.minimumf %212, %213 : vector<16x128xf32>
    %215 = arith.minimumf %201, %214 : vector<16x128xf32>
    %216 = arith.maximumf %212, %213 : vector<16x128xf32>
    %217 = arith.maximumf %203, %216 : vector<16x128xf32>
    %218 = arith.addf %209, %2 : vector<16x128xf32>
    %cst_74 = arith.constant 1.000000e+00 : f32
    %219 = vector.broadcast %cst_74 : f32 to vector<16x128xf32>
    %220 = arith.cmpf oge, %218, %219 : vector<16x128xf32>
    %cst_75 = arith.constant 1.000000e+00 : f32
    %221 = vector.broadcast %cst_75 : f32 to vector<16x128xf32>
    %222 = arith.subf %218, %221 : vector<16x128xf32>
    %223 = arith.select %220, %222, %218 : vector<16x128xi1>, vector<16x128xf32>
    %cst_76 = arith.constant 1.000000e+00 : f32
    %224 = vector.broadcast %cst_76 : f32 to vector<16x128xf32>
    %225 = arith.addf %223, %224 : vector<16x128xf32>
    %226 = arith.select %220, %225, %4 : vector<16x128xi1>, vector<16x128xf32>
    %227 = arith.select %220, %5, %223 : vector<16x128xi1>, vector<16x128xf32>
    %228 = arith.minimumf %226, %227 : vector<16x128xf32>
    %229 = arith.minimumf %215, %228 : vector<16x128xf32>
    %230 = arith.maximumf %226, %227 : vector<16x128xf32>
    %231 = arith.maximumf %217, %230 : vector<16x128xf32>
    %232 = arith.addf %223, %2 : vector<16x128xf32>
    %cst_77 = arith.constant 1.000000e+00 : f32
    %233 = vector.broadcast %cst_77 : f32 to vector<16x128xf32>
    %234 = arith.cmpf oge, %232, %233 : vector<16x128xf32>
    %cst_78 = arith.constant 1.000000e+00 : f32
    %235 = vector.broadcast %cst_78 : f32 to vector<16x128xf32>
    %236 = arith.subf %232, %235 : vector<16x128xf32>
    %237 = arith.select %234, %236, %232 : vector<16x128xi1>, vector<16x128xf32>
    %cst_79 = arith.constant 1.000000e+00 : f32
    %238 = vector.broadcast %cst_79 : f32 to vector<16x128xf32>
    %239 = arith.addf %237, %238 : vector<16x128xf32>
    %240 = arith.select %234, %239, %4 : vector<16x128xi1>, vector<16x128xf32>
    %241 = arith.select %234, %5, %237 : vector<16x128xi1>, vector<16x128xf32>
    %242 = arith.minimumf %240, %241 : vector<16x128xf32>
    %243 = arith.minimumf %229, %242 : vector<16x128xf32>
    %244 = arith.maximumf %240, %241 : vector<16x128xf32>
    %245 = arith.maximumf %231, %244 : vector<16x128xf32>
    %cst_80 = arith.constant 9.990000e-01 : f32
    %246 = vector.broadcast %cst_80 : f32 to vector<16x128xf32>
    %247 = arith.subf %243, %246 : vector<16x128xf32>
    %cst_81 = arith.constant 1.000000e+00 : f32
    %248 = vector.broadcast %cst_81 : f32 to vector<16x128xf32>
    %249 = arith.maximumf %247, %248 : vector<16x128xf32>
    %cst_82 = arith.constant 1.001000e+00 : f32
    %250 = vector.broadcast %cst_82 : f32 to vector<16x128xf32>
    %251 = arith.subf %250, %245 : vector<16x128xf32>
    %cst_83 = arith.constant 1.000000e+00 : f32
    %252 = vector.broadcast %cst_83 : f32 to vector<16x128xf32>
    %253 = arith.maximumf %251, %252 : vector<16x128xf32>
    %254 = arith.mulf %97, %249 : vector<16x128xf32>
    %255 = arith.subf %187, %254 : vector<16x128xf32>
    %256 = arith.mulf %102, %253 : vector<16x128xf32>
    %257 = arith.addf %255, %256 : vector<16x128xf32>
    %258 = arith.addf %257, %2 : vector<16x128xf32>
    %cst_84 = arith.constant 1.000000e+00 : f32
    %259 = vector.broadcast %cst_84 : f32 to vector<16x128xf32>
    %260 = arith.cmpf oge, %258, %259 : vector<16x128xf32>
    %cst_85 = arith.constant 8.000000e+00 : f32
    %cst_86 = arith.constant 0.000000e+00 : f32
    %261 = vector.broadcast %cst_85 : f32 to vector<16x128xf32>
    %262 = vector.broadcast %cst_86 : f32 to vector<16x128xf32>
    %263 = arith.select %260, %261, %262 : vector<16x128xi1>, vector<16x128xf32>
    %264 = arith.truncf %263 : vector<16x128xf32> to vector<16x128xbf16>
    %c0_87 = arith.constant 0 : index
    %c0_88 = arith.constant 0 : index
    %c0_89 = arith.constant 0 : index
    %265 = vector.load %arg2[%c0_87, %c0_88, %c0_89] : memref<8x16x128xbf16, #tpu.memory_space<vmem>>, vector<1x16x128xbf16>
    %266 = vector.shape_cast %265 : vector<1x16x128xbf16> to vector<16x128xbf16>
    %267 = vector.shape_cast %264 : vector<16x128xbf16> to vector<1x16x128xbf16>
    tpu.vector_store %arg2[%c0_87, %c0_88, %c0_89], %267 {strides = array<i32>} : memref<8x16x128xbf16, #tpu.memory_space<vmem>>, vector<1x16x128xbf16>,
    %cst_90 = arith.constant 1.000000e+00 : f32
    %268 = vector.broadcast %cst_90 : f32 to vector<16x128xf32>
    %269 = arith.subf %258, %268 : vector<16x128xf32>
    %270 = arith.select %260, %269, %258 : vector<16x128xi1>, vector<16x128xf32>
    %271 = arith.addf %270, %2 : vector<16x128xf32>
    %cst_91 = arith.constant 1.000000e+00 : f32
    %272 = vector.broadcast %cst_91 : f32 to vector<16x128xf32>
    %273 = arith.cmpf oge, %271, %272 : vector<16x128xf32>
    %cst_92 = arith.constant 8.000000e+00 : f32
    %cst_93 = arith.constant 0.000000e+00 : f32
    %274 = vector.broadcast %cst_92 : f32 to vector<16x128xf32>
    %275 = vector.broadcast %cst_93 : f32 to vector<16x128xf32>
    %276 = arith.select %273, %274, %275 : vector<16x128xi1>, vector<16x128xf32>
    %277 = arith.truncf %276 : vector<16x128xf32> to vector<16x128xbf16>
    %c1 = arith.constant 1 : index
    %c0_94 = arith.constant 0 : index
    %c0_95 = arith.constant 0 : index
    %278 = vector.load %arg2[%c1, %c0_94, %c0_95] : memref<8x16x128xbf16, #tpu.memory_space<vmem>>, vector<1x16x128xbf16>
    %279 = vector.shape_cast %278 : vector<1x16x128xbf16> to vector<16x128xbf16>
    %280 = vector.shape_cast %277 : vector<16x128xbf16> to vector<1x16x128xbf16>
    tpu.vector_store %arg2[%c1, %c0_94, %c0_95], %280 {strides = array<i32>} : memref<8x16x128xbf16, #tpu.memory_space<vmem>>, vector<1x16x128xbf16>,
    %cst_96 = arith.constant 1.000000e+00 : f32
    %281 = vector.broadcast %cst_96 : f32 to vector<16x128xf32>
    %282 = arith.subf %271, %281 : vector<16x128xf32>
    %283 = arith.select %273, %282, %271 : vector<16x128xi1>, vector<16x128xf32>
    %284 = arith.addf %283, %2 : vector<16x128xf32>
    %cst_97 = arith.constant 1.000000e+00 : f32
    %285 = vector.broadcast %cst_97 : f32 to vector<16x128xf32>
    %286 = arith.cmpf oge, %284, %285 : vector<16x128xf32>
    %cst_98 = arith.constant 8.000000e+00 : f32
    %cst_99 = arith.constant 0.000000e+00 : f32
    %287 = vector.broadcast %cst_98 : f32 to vector<16x128xf32>
    %288 = vector.broadcast %cst_99 : f32 to vector<16x128xf32>
    %289 = arith.select %286, %287, %288 : vector<16x128xi1>, vector<16x128xf32>
    %290 = arith.truncf %289 : vector<16x128xf32> to vector<16x128xbf16>
    %c2 = arith.constant 2 : index
    %c0_100 = arith.constant 0 : index
    %c0_101 = arith.constant 0 : index
    %291 = vector.load %arg2[%c2, %c0_100, %c0_101] : memref<8x16x128xbf16, #tpu.memory_space<vmem>>, vector<1x16x128xbf16>
    %292 = vector.shape_cast %291 : vector<1x16x128xbf16> to vector<16x128xbf16>
    %293 = vector.shape_cast %290 : vector<16x128xbf16> to vector<1x16x128xbf16>
    tpu.vector_store %arg2[%c2, %c0_100, %c0_101], %293 {strides = array<i32>} : memref<8x16x128xbf16, #tpu.memory_space<vmem>>, vector<1x16x128xbf16>,
    %cst_102 = arith.constant 1.000000e+00 : f32
    %294 = vector.broadcast %cst_102 : f32 to vector<16x128xf32>
    %295 = arith.subf %284, %294 : vector<16x128xf32>
    %296 = arith.select %286, %295, %284 : vector<16x128xi1>, vector<16x128xf32>
    %297 = arith.addf %296, %2 : vector<16x128xf32>
    %cst_103 = arith.constant 1.000000e+00 : f32
    %298 = vector.broadcast %cst_103 : f32 to vector<16x128xf32>
    %299 = arith.cmpf oge, %297, %298 : vector<16x128xf32>
    %cst_104 = arith.constant 8.000000e+00 : f32
    %cst_105 = arith.constant 0.000000e+00 : f32
    %300 = vector.broadcast %cst_104 : f32 to vector<16x128xf32>
    %301 = vector.broadcast %cst_105 : f32 to vector<16x128xf32>
    %302 = arith.select %299, %300, %301 : vector<16x128xi1>, vector<16x128xf32>
    %303 = arith.truncf %302 : vector<16x128xf32> to vector<16x128xbf16>
    %c3 = arith.constant 3 : index
    %c0_106 = arith.constant 0 : index
    %c0_107 = arith.constant 0 : index
    %304 = vector.load %arg2[%c3, %c0_106, %c0_107] : memref<8x16x128xbf16, #tpu.memory_space<vmem>>, vector<1x16x128xbf16>
    %305 = vector.shape_cast %304 : vector<1x16x128xbf16> to vector<16x128xbf16>
    %306 = vector.shape_cast %303 : vector<16x128xbf16> to vector<1x16x128xbf16>
    tpu.vector_store %arg2[%c3, %c0_106, %c0_107], %306 {strides = array<i32>} : memref<8x16x128xbf16, #tpu.memory_space<vmem>>, vector<1x16x128xbf16>,
    %cst_108 = arith.constant 1.000000e+00 : f32
    %307 = vector.broadcast %cst_108 : f32 to vector<16x128xf32>
    %308 = arith.subf %297, %307 : vector<16x128xf32>
    %309 = arith.select %299, %308, %297 : vector<16x128xi1>, vector<16x128xf32>
    %310 = arith.addf %309, %2 : vector<16x128xf32>
    %cst_109 = arith.constant 1.000000e+00 : f32
    %311 = vector.broadcast %cst_109 : f32 to vector<16x128xf32>
    %312 = arith.cmpf oge, %310, %311 : vector<16x128xf32>
    %cst_110 = arith.constant 8.000000e+00 : f32
    %cst_111 = arith.constant 0.000000e+00 : f32
    %313 = vector.broadcast %cst_110 : f32 to vector<16x128xf32>
    %314 = vector.broadcast %cst_111 : f32 to vector<16x128xf32>
    %315 = arith.select %312, %313, %314 : vector<16x128xi1>, vector<16x128xf32>
    %316 = arith.truncf %315 : vector<16x128xf32> to vector<16x128xbf16>
    %c4 = arith.constant 4 : index
    %c0_112 = arith.constant 0 : index
    %c0_113 = arith.constant 0 : index
    %317 = vector.load %arg2[%c4, %c0_112, %c0_113] : memref<8x16x128xbf16, #tpu.memory_space<vmem>>, vector<1x16x128xbf16>
    %318 = vector.shape_cast %317 : vector<1x16x128xbf16> to vector<16x128xbf16>
    %319 = vector.shape_cast %316 : vector<16x128xbf16> to vector<1x16x128xbf16>
    tpu.vector_store %arg2[%c4, %c0_112, %c0_113], %319 {strides = array<i32>} : memref<8x16x128xbf16, #tpu.memory_space<vmem>>, vector<1x16x128xbf16>,
    %cst_114 = arith.constant 1.000000e+00 : f32
    %320 = vector.broadcast %cst_114 : f32 to vector<16x128xf32>
    %321 = arith.subf %310, %320 : vector<16x128xf32>
    %322 = arith.select %312, %321, %310 : vector<16x128xi1>, vector<16x128xf32>
    %323 = arith.addf %322, %2 : vector<16x128xf32>
    %cst_115 = arith.constant 1.000000e+00 : f32
    %324 = vector.broadcast %cst_115 : f32 to vector<16x128xf32>
    %325 = arith.cmpf oge, %323, %324 : vector<16x128xf32>
    %cst_116 = arith.constant 8.000000e+00 : f32
    %cst_117 = arith.constant 0.000000e+00 : f32
    %326 = vector.broadcast %cst_116 : f32 to vector<16x128xf32>
    %327 = vector.broadcast %cst_117 : f32 to vector<16x128xf32>
    %328 = arith.select %325, %326, %327 : vector<16x128xi1>, vector<16x128xf32>
    %329 = arith.truncf %328 : vector<16x128xf32> to vector<16x128xbf16>
    %c5 = arith.constant 5 : index
    %c0_118 = arith.constant 0 : index
    %c0_119 = arith.constant 0 : index
    %330 = vector.load %arg2[%c5, %c0_118, %c0_119] : memref<8x16x128xbf16, #tpu.memory_space<vmem>>, vector<1x16x128xbf16>
    %331 = vector.shape_cast %330 : vector<1x16x128xbf16> to vector<16x128xbf16>
    %332 = vector.shape_cast %329 : vector<16x128xbf16> to vector<1x16x128xbf16>
    tpu.vector_store %arg2[%c5, %c0_118, %c0_119], %332 {strides = array<i32>} : memref<8x16x128xbf16, #tpu.memory_space<vmem>>, vector<1x16x128xbf16>,
    %cst_120 = arith.constant 1.000000e+00 : f32
    %333 = vector.broadcast %cst_120 : f32 to vector<16x128xf32>
    %334 = arith.subf %323, %333 : vector<16x128xf32>
    %335 = arith.select %325, %334, %323 : vector<16x128xi1>, vector<16x128xf32>
    %336 = arith.addf %335, %2 : vector<16x128xf32>
    %cst_121 = arith.constant 1.000000e+00 : f32
    %337 = vector.broadcast %cst_121 : f32 to vector<16x128xf32>
    %338 = arith.cmpf oge, %336, %337 : vector<16x128xf32>
    %cst_122 = arith.constant 8.000000e+00 : f32
    %cst_123 = arith.constant 0.000000e+00 : f32
    %339 = vector.broadcast %cst_122 : f32 to vector<16x128xf32>
    %340 = vector.broadcast %cst_123 : f32 to vector<16x128xf32>
    %341 = arith.select %338, %339, %340 : vector<16x128xi1>, vector<16x128xf32>
    %342 = arith.truncf %341 : vector<16x128xf32> to vector<16x128xbf16>
    %c6 = arith.constant 6 : index
    %c0_124 = arith.constant 0 : index
    %c0_125 = arith.constant 0 : index
    %343 = vector.load %arg2[%c6, %c0_124, %c0_125] : memref<8x16x128xbf16, #tpu.memory_space<vmem>>, vector<1x16x128xbf16>
    %344 = vector.shape_cast %343 : vector<1x16x128xbf16> to vector<16x128xbf16>
    %345 = vector.shape_cast %342 : vector<16x128xbf16> to vector<1x16x128xbf16>
    tpu.vector_store %arg2[%c6, %c0_124, %c0_125], %345 {strides = array<i32>} : memref<8x16x128xbf16, #tpu.memory_space<vmem>>, vector<1x16x128xbf16>,
    %cst_126 = arith.constant 1.000000e+00 : f32
    %346 = vector.broadcast %cst_126 : f32 to vector<16x128xf32>
    %347 = arith.subf %336, %346 : vector<16x128xf32>
    %348 = arith.select %338, %347, %336 : vector<16x128xi1>, vector<16x128xf32>
    %349 = arith.addf %348, %2 : vector<16x128xf32>
    %cst_127 = arith.constant 1.000000e+00 : f32
    %350 = vector.broadcast %cst_127 : f32 to vector<16x128xf32>
    %351 = arith.cmpf oge, %349, %350 : vector<16x128xf32>
    %cst_128 = arith.constant 8.000000e+00 : f32
    %cst_129 = arith.constant 0.000000e+00 : f32
    %352 = vector.broadcast %cst_128 : f32 to vector<16x128xf32>
    %353 = vector.broadcast %cst_129 : f32 to vector<16x128xf32>
    %354 = arith.select %351, %352, %353 : vector<16x128xi1>, vector<16x128xf32>
    %355 = arith.truncf %354 : vector<16x128xf32> to vector<16x128xbf16>
    %c7 = arith.constant 7 : index
    %c0_130 = arith.constant 0 : index
    %c0_131 = arith.constant 0 : index
    %356 = vector.load %arg2[%c7, %c0_130, %c0_131] : memref<8x16x128xbf16, #tpu.memory_space<vmem>>, vector<1x16x128xbf16>
    %357 = vector.shape_cast %356 : vector<1x16x128xbf16> to vector<16x128xbf16>
    %358 = vector.shape_cast %355 : vector<16x128xbf16> to vector<1x16x128xbf16>
    tpu.vector_store %arg2[%c7, %c0_130, %c0_131], %358 {strides = array<i32>} : memref<8x16x128xbf16, #tpu.memory_space<vmem>>, vector<1x16x128xbf16>,
    return
  }
  func.func @transform_0(%arg0: i32) -> (i32, i32) {
    %c0_i32 = arith.constant 0 : i32
    %c0_i32_0 = arith.constant 0 : i32
    return %arg0, %c0_i32 : i32, i32
  }
  func.func @transform_1(%arg0: i32) -> (i32, i32, i32) {
    %c0_i32 = arith.constant 0 : i32
    %c0_i32_0 = arith.constant 0 : i32
    %c0_i32_1 = arith.constant 0 : i32
    return %c0_i32, %arg0, %c0_i32_0 : i32, i32, i32
  }
}

</mosaic_0001>

<bundles_post_ra>
// kernel: tpu_custom_call.1
= control target key start
LH: loop header
LB: loop body
LE: loop exit
PB: predicated region body
PF: predicated region fallthrough
CT: control target
= control target key end

     0   :  { %6 = vsyncpa [#allocation3], 0  ;;  %s839_s0 = inlined_call_operand.hbm [shape: f32[16,128], index: 0, kind: input, shape index: {}]   ;;  %s840_s1 = inlined_call_operand.hbm [shape: bf16[8,16,128], index: 1, kind: output, shape index: {}]  }
   0x1   :  { %7 = vsyncpa [#allocation4], 0  ;;  %s12_s8 = sshll.u32 %s839_s0, 4  ;;  %s620_s9 = smov [#allocation2]   ;;  %s13_s8 = int_to_ptr.hbm [resolvable:$true] %s12_s8 }
   0x2   :  { %s14_s10 = sshll.u32 %s620_s9, 4  ;;  %s621_s11 = smov 128   ;;  %s15_s10 = int_to_ptr.vmem [resolvable:$true] %s14_s10 }
   0x3   :  { %s622_s12 = smov 8  }
   0x4   :  { %20 = dma.hbm_to_vmem [thread:$0]  %s13_s8, 256, %s15_s10, [#allocation3], %s621_s11, %s621_s11, %s622_s12  }
   0x5   :  { %616 = dma.done.wait [#allocation3], 256  }
   0x6   :  { %617 = vsyncadd [#allocation3], 4294967040  ;;  %v25_v0 = vld [vmem:[#allocation2] sm:$0xff]  ;;  %v26_v1 = vld [vmem:[#allocation2 + $0x8] sm:$0xff]  ;;  %v623_v6 = vmov 0.0   ;;  %s624_s0 = smov [#allocation5]  }
   0x7   :  { %v640_v2 = vmul.f32 0.125, %v25_v0  ;;  %v642_v3 = vmul.f32 0.125, %v26_v1  ;;  %s486_s13 = sshll.u32 %s624_s0, 4  ;;  %s488_s16 = sshll.u32 %s840_s1, 4  ;;  %s487_s13 = int_to_ptr.vmem [resolvable:$true] %s486_s13  ;;  %s489_s16 = int_to_ptr.hbm [resolvable:$true] %s488_s16 }
   0x8   :  { %s625_s17 = smov 64   ;;  %s626_s18 = smov 4  }
   0x9   :  { %v29_v4 = vadd.f32 0.5, %v640_v2  ;;  %v30_v5 = vadd.f32 0.5, %v642_v3 }
   0xb   :  { %vm31_vm0 = vcmp.ge.f32.partialorder %v29_v4, 1.0  ;;  %vm32_vm1 = vcmp.ge.f32.partialorder %v30_v5, 1.0 }
   0xc   :  { %v33_v7 = vsel %vm31_vm0, 1.0, %v623_v6  ;;  %v34_v8 = vsel %vm32_vm1, 1.0, %v623_v6 }
   0xd   :  { %v35_v9 = vsub.f32 %v29_v4, %v33_v7  ;;  %v36_v10 = vsub.f32 %v30_v5, %v34_v8 }
   0xf   :  { %v49_v11 = vadd.f32 %v35_v9, %v640_v2  ;;  %v50_v12 = vadd.f32 %v36_v10, %v642_v3  ;;  %v39_v17 = vadd.f32 1.0, %v35_v9  ;;  %v40_v18 = vadd.f32 1.0, %v36_v10 }
  0x10   :  { %v43_v21 = vsel %vm31_vm0, -1000.0, %v35_v9  ;;  %v44_v22 = vsel %vm32_vm1, -1000.0, %v36_v10 }
  0x11   :  { %vm51_vm2 = vcmp.ge.f32.partialorder %v49_v11, 1.0  ;;  %vm52_vm3 = vcmp.ge.f32.partialorder %v50_v12, 1.0  ;;  %v41_v23 = vsel %vm31_vm0, %v39_v17, 1000.0  ;;  %v42_v24 = vsel %vm32_vm1, %v40_v18, 1000.0 }
  0x12   :  { %v53_v13 = vsel %vm51_vm2, 1.0, %v623_v6  ;;  %v54_v14 = vsel %vm52_vm3, 1.0, %v623_v6  ;;  %v47_v31 = vmax.f32 %v43_v21, -1e+30  ;;  %v48_v32 = vmax.f32 %v44_v22, -1e+30 }
  0x13   :  { %v55_v15 = vsub.f32 %v49_v11, %v53_v13  ;;  %v56_v16 = vsub.f32 %v50_v12, %v54_v14  ;;  %v57_v33 = vadd.f32 %v53_v13, %v33_v7  ;;  %v58_v34 = vadd.f32 %v54_v14, %v34_v8 }
  0x14   :  { %v45_v37 = vmin.f32 %v41_v23, 1e+30  ;;  %v46_v38 = vmin.f32 %v42_v24, 1e+30 }
  0x15   :  { %v69_v19 = vadd.f32 %v55_v15, %v640_v2  ;;  %v70_v20 = vadd.f32 %v56_v16, %v642_v3  ;;  %v59_v27 = vadd.f32 1.0, %v55_v15  ;;  %v60_v28 = vadd.f32 1.0, %v56_v16 }
  0x16   :  { %v63_v35 = vsel %vm51_vm2, -1000.0, %v55_v15  ;;  %v64_v36 = vsel %vm52_vm3, -1000.0, %v56_v16 }
  0x17   :  { %vm71_vm4 = vcmp.ge.f32.partialorder %v69_v19, 1.0  ;;  %vm72_vm5 = vcmp.ge.f32.partialorder %v70_v20, 1.0  ;;  %v61_v41 = vsel %vm51_vm2, %v59_v27, 1000.0  ;;  %v62_v42 = vsel %vm52_vm3, %v60_v28, 1000.0 }
  0x18   :  { %v73_v25 = vsel %vm71_vm4, 1.0, %v623_v6  ;;  %v74_v26 = vsel %vm72_vm5, 1.0, %v623_v6  ;;  %v67_v45 = vmax.f32 %v47_v31, %v63_v35  ;;  %v68_v46 = vmax.f32 %v48_v32, %v64_v36 }
  0x19   :  { %v75_v29 = vsub.f32 %v69_v19, %v73_v25  ;;  %v76_v30 = vsub.f32 %v70_v20, %v74_v26  ;;  %v77_v47 = vadd.f32 %v73_v25, %v57_v33  ;;  %v78_v48 = vadd.f32 %v74_v26, %v58_v34 }
  0x1a   :  { %v65_v51 = vmin.f32 %v45_v37, %v61_v41  ;;  %v66_v52 = vmin.f32 %v46_v38, %v62_v42 }
  0x1b   :  { %v89_v39 = vadd.f32 %v75_v29, %v640_v2  ;;  %v90_v40 = vadd.f32 %v76_v30, %v642_v3  ;;  %v79_v43 = vadd.f32 1.0, %v75_v29  ;;  %v80_v44 = vadd.f32 1.0, %v76_v30 }
  0x1c   :  { %v83_v57 = vsel %vm71_vm4, -1000.0, %v75_v29  ;;  %v84_v58 = vsel %vm72_vm5, -1000.0, %v76_v30 }
  0x1d   :  { %vm91_vm6 = vcmp.ge.f32.partialorder %v89_v39, 1.0  ;;  %vm92_vm7 = vcmp.ge.f32.partialorder %v90_v40, 1.0  ;;  %v81_v55 = vsel %vm71_vm4, %v79_v43, 1000.0  ;;  %v82_v56 = vsel %vm72_vm5, %v80_v44, 1000.0 }
  0x1e   :  { %v93_v49 = vsel %vm91_vm6, 1.0, %v623_v6  ;;  %v94_v50 = vsel %vm92_vm7, 1.0, %v623_v6  ;;  %v85_v63 = vmin.f32 %v65_v51, %v81_v55  ;;  %v86_v0 = vmin.f32 %v66_v52, %v82_v56 }
  0x1f   :  { %v676_v53 = vsub.f32 %v89_v39, %v93_v49  ;;  %v678_v54 = vsub.f32 %v90_v40, %v94_v50  ;;  %v686_v61 = vadd.f32 %v93_v49, %v77_v47  ;;  %v688_v62 = vadd.f32 %v94_v50, %v78_v48 }
  0x20   :  { %v87_v1 = vmax.f32 %v67_v45, %v83_v57  ;;  %v88_v4 = vmax.f32 %v68_v46, %v84_v58 }
  0x21   :  { %v99_v59 = vadd.f32 1.0, %v676_v53  ;;  %v100_v60 = vadd.f32 1.0, %v678_v54  ;;  %v103_v8 = vsel %vm91_vm6, -1000.0, %v676_v53  ;;  %v104_v9 = vsel %vm92_vm7, -1000.0, %v678_v54 }
  0x22   :  { %vm111_vm8 = vcmp.gt.f32.partialorder %v686_v61, 0.001  ;;  %vm112_vm9 = vcmp.gt.f32.partialorder %v688_v62, 0.001  ;;  %v107_v12 = vmax.f32 %v87_v1, %v103_v8  ;;  %v108_v13 = vmax.f32 %v88_v4, %v104_v9 }
  0x23   :  { %v101_v5 = vsel %vm91_vm6, %v99_v59, 1000.0  ;;  %v102_v7 = vsel %vm92_vm7, %v100_v60, 1000.0  ;;  %vm109_vm10 = vcmp.lt.f32.partialorder %v676_v53, 0.0  ;;  %vm110_vm11 = vcmp.lt.f32.partialorder %v678_v54, 0.0 }
  0x24   :  { %v105_v10 = vmin.f32 %v85_v63, %v101_v5  ;;  %v106_v11 = vmin.f32 %v86_v0, %v102_v7  ;;  %vm129_vm12 = vcmp.lt.f32.partialorder %v676_v53, -2.0  ;;  %vm130_vm13 = vcmp.lt.f32.partialorder %v678_v54, -2.0 }
  0x25   :  { %v113_v14 = vsel %vm111_vm8, 1.0, %v623_v6  ;;  %v114_v15 = vsel %vm112_vm9, 1.0, %v623_v6  ;;  %vm131_vm14 = vcmp.gt.f32.partialorder %v686_v61, 2.0  ;;  %vm132_vm15 = vcmp.gt.f32.partialorder %v688_v62, 2.0 }
  0x26   :  { %v133_v16 = vsel %vm131_vm14, 1.0, %v623_v6  ;;  %v134_v17 = vsel %vm132_vm15, 1.0, %v623_v6  ;;  %v501_v20 = vadd.f32 -0.999, %v105_v10  ;;  %v502_v21 = vadd.f32 -0.999, %v106_v11 }
  0x27   :  { %v708_v18 = vsel %vm129_vm12, %v133_v16, 0.0  ;;  %v710_v19 = vsel %vm130_vm13, %v134_v17, 0.0  ;;  %v115_v22 = vsel %vm109_vm10, %v113_v14, 0.0  ;;  %v116_v23 = vsel %vm110_vm11, %v114_v15, 0.0 }
  0x28   :  { %v145_v24 = vsub.f32 1.001, %v107_v12  ;;  %v146_v25 = vsub.f32 1.001, %v108_v13  ;;  %v143_v26 = vmax.f32 %v501_v20, 1.0  ;;  %v144_v27 = vmax.f32 %v502_v21, 1.0 }
  0x29   :  { %vm153_vm0 = vcmp.ge.f32.partialorder %v676_v53, 1.0  ;;  %vm154_vm1 = vcmp.ge.f32.partialorder %v678_v54, 1.0  ;;  %vm119_vm10 = vcmp.gt.f32.partialorder %v686_v61, 1.0  ;;  %vm120_vm11 = vcmp.gt.f32.partialorder %v688_v62, 1.0 }
  0x2a   :  { %v147_v28 = vmax.f32 %v145_v24, 1.0  ;;  %v148_v29 = vmax.f32 %v146_v25, 1.0  ;;  %v149_v30 = vmul.f32 %v143_v26, %v115_v22  ;;  %v150_v31 = vmul.f32 %v144_v27, %v116_v23 }
  0x2b   :  { %vm117_vm12 = vcmp.lt.f32.partialorder %v676_v53, -1.0  ;;  %vm118_vm13 = vcmp.lt.f32.partialorder %v678_v54, -1.0  ;;  %vm125_vm14 = vcmp.ge.f32.partialorder %v676_v53, 2.0  ;;  %vm126_vm15 = vcmp.ge.f32.partialorder %v678_v54, 2.0 }
  0x2c   :  { %v155_v32 = vadd.f32 0.5, %v147_v28  ;;  %v156_v33 = vadd.f32 0.5, %v148_v29  ;;  %v151_v34 = vsub.f32 0.5, %v149_v30  ;;  %v152_v35 = vsub.f32 0.5, %v150_v31 }
  0x2d   :  { %v128_v62 = vsel %vm126_vm15, 1.0, %v623_v6 }
  0x2e   :  { %v714_v36 = vsel %vm153_vm0, %v155_v32, %v151_v34  ;;  %v716_v37 = vsel %vm154_vm1, %v156_v33, %v152_v35 }
  0x2f   :  { %v159_v38 = vadd.f32 %v714_v36, %v640_v2  ;;  %v160_v39 = vadd.f32 %v716_v37, %v642_v3 }
  0x31   :  { %vm161_vm2 = vcmp.ge.f32.partialorder %v159_v38, 1.0  ;;  %vm162_vm3 = vcmp.ge.f32.partialorder %v160_v39, 1.0  ;;  %v503_v40 = vadd.f32 -1.0, %v159_v38  ;;  %v504_v41 = vadd.f32 -1.0, %v160_v39 }
  0x32   :  { %v171_v48 = vsel %vm161_vm2, -1000.0, %v159_v38  ;;  %v172_v49 = vsel %vm162_vm3, -1000.0, %v160_v39 }
  0x33   :  { %v165_v42 = vsel %vm161_vm2, %v503_v40, %v159_v38  ;;  %v166_v43 = vsel %vm162_vm3, %v504_v41, %v160_v39 }
  0x34   :  { %v167_v44 = vadd.f32 1.0, %v165_v42  ;;  %v168_v45 = vadd.f32 1.0, %v166_v43  ;;  %v181_v46 = vadd.f32 %v165_v42, %v640_v2  ;;  %v182_v47 = vadd.f32 %v166_v43, %v642_v3 }
  0x36   :  { %v169_v50 = vsel %vm161_vm2, %v167_v44, 1000.0  ;;  %v170_v51 = vsel %vm162_vm3, %v168_v45, 1000.0  ;;  %vm183_vm4 = vcmp.ge.f32.partialorder %v181_v46, 1.0  ;;  %vm184_vm5 = vcmp.ge.f32.partialorder %v182_v47, 1.0 }
  0x37   :  { %v505_v52 = vadd.f32 -1.0, %v181_v46  ;;  %v506_v55 = vadd.f32 -1.0, %v182_v47  ;;  %v173_v56 = vmin.f32 %v169_v50, %v171_v48  ;;  %v174_v57 = vmin.f32 %v170_v51, %v172_v49 }
  0x38   :  { %v177_v4 = vmax.f32 %v169_v50, %v171_v48  ;;  %v178_v5 = vmax.f32 %v170_v51, %v172_v49  ;;  %v193_v7 = vsel %vm183_vm4, -1000.0, %v181_v46  ;;  %v194_v8 = vsel %vm184_vm5, -1000.0, %v182_v47 }
  0x39   :  { %v187_v58 = vsel %vm183_vm4, %v505_v52, %v181_v46  ;;  %v188_v59 = vsel %vm184_vm5, %v506_v55, %v182_v47  ;;  %v175_v11 = vmin.f32 %v173_v56, 1e+30  ;;  %v176_v12 = vmin.f32 %v174_v57, 1e+30 }
  0x3a   :  { %v189_v60 = vadd.f32 1.0, %v187_v58  ;;  %v190_v63 = vadd.f32 1.0, %v188_v59  ;;  %v203_v0 = vadd.f32 %v187_v58, %v640_v2  ;;  %v204_v1 = vadd.f32 %v188_v59, %v642_v3 }
  0x3b   :  { %v179_v17 = vmax.f32 %v177_v4, -1e+30  ;;  %v180_v20 = vmax.f32 %v178_v5, -1e+30  ;;  %v122_v4 = vsel %vm120_vm11, 1.0, %v623_v6 }
  0x3c   :  { %v191_v9 = vsel %vm183_vm4, %v189_v60, 1000.0  ;;  %v192_v10 = vsel %vm184_vm5, %v190_v63, 1000.0  ;;  %vm205_vm6 = vcmp.ge.f32.partialorder %v203_v0, 1.0  ;;  %vm206_vm7 = vcmp.ge.f32.partialorder %v204_v1, 1.0 }
  0x3d   :  { %v195_v13 = vmin.f32 %v191_v9, %v193_v7  ;;  %v196_v14 = vmin.f32 %v192_v10, %v194_v8  ;;  %v507_v15 = vadd.f32 -1.0, %v203_v0  ;;  %v508_v16 = vadd.f32 -1.0, %v204_v1 }
  0x3e   :  { %v199_v21 = vmax.f32 %v191_v9, %v193_v7  ;;  %v200_v22 = vmax.f32 %v192_v10, %v194_v8  ;;  %v215_v25 = vsel %vm205_vm6, -1000.0, %v203_v0  ;;  %v216_v26 = vsel %vm206_vm7, -1000.0, %v204_v1 }
  0x3f   :  { %v209_v23 = vsel %vm205_vm6, %v507_v15, %v203_v0  ;;  %v210_v24 = vsel %vm206_vm7, %v508_v16, %v204_v1  ;;  %v197_v31 = vmin.f32 %v175_v11, %v195_v13  ;;  %v198_v32 = vmin.f32 %v176_v12, %v196_v14 }
  0x40   :  { %v211_v27 = vadd.f32 1.0, %v209_v23  ;;  %v212_v28 = vadd.f32 1.0, %v210_v24  ;;  %v225_v29 = vadd.f32 %v209_v23, %v640_v2  ;;  %v226_v30 = vadd.f32 %v210_v24, %v642_v3 }
  0x41   :  { %v201_v33 = vmax.f32 %v179_v17, %v199_v21  ;;  %v202_v34 = vmax.f32 %v180_v20, %v200_v22  ;;  %v121_v1 = vsel %vm119_vm10, 1.0, %v623_v6  ;;  %v124_v61 = vsel %vm118_vm13, %v122_v4, 0.0 }
  0x42   :  { %v213_v35 = vsel %vm205_vm6, %v211_v27, 1000.0  ;;  %v214_v38 = vsel %vm206_vm7, %v212_v28, 1000.0  ;;  %vm227_vm8 = vcmp.ge.f32.partialorder %v225_v29, 1.0  ;;  %vm228_vm9 = vcmp.ge.f32.partialorder %v226_v30, 1.0 }
  0x43   :  { %v217_v39 = vmin.f32 %v213_v35, %v215_v25  ;;  %v218_v40 = vmin.f32 %v214_v38, %v216_v26  ;;  %v221_v41 = vmax.f32 %v213_v35, %v215_v25  ;;  %v222_v42 = vmax.f32 %v214_v38, %v216_v26 }
  0x44   :  { %v509_v43 = vadd.f32 -1.0, %v225_v29  ;;  %v510_v44 = vadd.f32 -1.0, %v226_v30  ;;  %v237_v49 = vsel %vm227_vm8, -1000.0, %v225_v29  ;;  %v238_v50 = vsel %vm228_vm9, -1000.0, %v226_v30 }
  0x45   :  { %v219_v51 = vmin.f32 %v197_v31, %v217_v39  ;;  %v220_v52 = vmin.f32 %v198_v32, %v218_v40  ;;  %v223_v55 = vmax.f32 %v201_v33, %v221_v41  ;;  %v224_v56 = vmax.f32 %v202_v34, %v222_v42 }
  0x46   :  { %v231_v45 = vsel %vm227_vm8, %v509_v43, %v225_v29  ;;  %v232_v46 = vsel %vm228_vm9, %v510_v44, %v226_v30  ;;  %v123_v13 = vsel %vm117_vm12, %v121_v1, 0.0  ;;  %v127_v14 = vsel %vm125_vm14, 1.0, %v623_v6 }
  0x47   :  { %v233_v47 = vadd.f32 1.0, %v231_v45  ;;  %v234_v48 = vadd.f32 1.0, %v232_v46 }
  0x49   :  { %v235_v57 = vsel %vm227_vm8, %v233_v47, 1000.0  ;;  %v236_v58 = vsel %vm228_vm9, %v234_v48, 1000.0  ;;  %vm137_vm8 = vcmp.ge.f32.partialorder %v676_v53, 3.0  ;;  %vm138_vm9 = vcmp.ge.f32.partialorder %v678_v54, 3.0 }
  0x4a   :  { %v239_v59 = vmin.f32 %v235_v57, %v237_v49  ;;  %v240_v60 = vmin.f32 %v236_v58, %v238_v50  ;;  %v243_v63 = vmax.f32 %v235_v57, %v237_v49  ;;  %v244_v0 = vmax.f32 %v236_v58, %v238_v50 }
  0x4c   :  { %v241_v5 = vmin.f32 %v219_v51, %v239_v59  ;;  %v242_v7 = vmin.f32 %v220_v52, %v240_v60  ;;  %v245_v8 = vmax.f32 %v223_v55, %v243_v63  ;;  %v246_v9 = vmax.f32 %v224_v56, %v244_v0 }
  0x4e   :  { %v511_v10 = vadd.f32 -0.999, %v241_v5  ;;  %v512_v11 = vadd.f32 -0.999, %v242_v7  ;;  %v251_v12 = vsub.f32 1.001, %v245_v8 }
  0x4f   :  { %v252_v15 = vsub.f32 1.001, %v246_v9 }
  0x50   :  { %v249_v16 = vmax.f32 %v511_v10, 1.0  ;;  %v250_v17 = vmax.f32 %v512_v11, 1.0  ;;  %v253_v20 = vmax.f32 %v251_v12, 1.0 }
  0x51   :  { %v254_v21 = vmax.f32 %v252_v15, 1.0 }
  0x52   :  { %v255_v22 = vmul.f32 %v249_v16, %v123_v13  ;;  %v256_v23 = vmul.f32 %v250_v17, %v124_v61  ;;  %v259_v24 = vmul.f32 %v253_v20, %v127_v14 }
  0x53   :  { %v260_v25 = vmul.f32 %v254_v21, %v128_v62 }
  0x54   :  { %v257_v26 = vsub.f32 %v714_v36, %v255_v22  ;;  %v258_v27 = vsub.f32 %v716_v37, %v256_v23 }
  0x56   :  { %v764_v28 = vadd.f32 %v259_v24, %v257_v26  ;;  %v766_v29 = vadd.f32 %v260_v25, %v258_v27 }
  0x58   :  { %v263_v30 = vadd.f32 %v764_v28, %v640_v2  ;;  %v264_v31 = vadd.f32 %v766_v29, %v642_v3 }
  0x5a   :  { %vm265_vm0 = vcmp.ge.f32.partialorder %v263_v30, 1.0  ;;  %vm266_vm1 = vcmp.ge.f32.partialorder %v264_v31, 1.0  ;;  %v513_v32 = vadd.f32 -1.0, %v263_v30  ;;  %v514_v33 = vadd.f32 -1.0, %v264_v31 }
  0x5b   :  { %v275_v40 = vsel %vm265_vm0, -1000.0, %v263_v30  ;;  %v276_v41 = vsel %vm266_vm1, -1000.0, %v264_v31 }
  0x5c   :  { %v269_v34 = vsel %vm265_vm0, %v513_v32, %v263_v30  ;;  %v270_v35 = vsel %vm266_vm1, %v514_v33, %v264_v31 }
  0x5d   :  { %v271_v38 = vadd.f32 1.0, %v269_v34  ;;  %v272_v36 = vadd.f32 1.0, %v270_v35  ;;  %v285_v37 = vadd.f32 %v269_v34, %v640_v2  ;;  %v286_v39 = vadd.f32 %v270_v35, %v642_v3 }
  0x5f   :  { %v273_v42 = vsel %vm265_vm0, %v271_v38, 1000.0  ;;  %v274_v43 = vsel %vm266_vm1, %v272_v36, 1000.0  ;;  %vm287_vm2 = vcmp.ge.f32.partialorder %v285_v37, 1.0  ;;  %vm288_vm3 = vcmp.ge.f32.partialorder %v286_v39, 1.0 }
  0x60   :  { %v515_v44 = vadd.f32 -1.0, %v285_v37  ;;  %v516_v45 = vadd.f32 -1.0, %v286_v39  ;;  %v277_v46 = vmin.f32 %v273_v42, %v275_v40  ;;  %v278_v47 = vmin.f32 %v274_v43, %v276_v41 }
  0x61   :  { %v281_v56 = vmax.f32 %v273_v42, %v275_v40  ;;  %v282_v57 = vmax.f32 %v274_v43, %v276_v41  ;;  %v297_v58 = vsel %vm287_vm2, -1000.0, %v285_v37  ;;  %v298_v59 = vsel %vm288_vm3, -1000.0, %v286_v39 }
  0x62   :  { %v291_v48 = vsel %vm287_vm2, %v515_v44, %v285_v37  ;;  %v292_v49 = vsel %vm288_vm3, %v516_v45, %v286_v39  ;;  %v279_v0 = vmin.f32 %v277_v46, 1e+30  ;;  %v280_v1 = vmin.f32 %v278_v47, 1e+30 }
  0x63   :  { %v293_v50 = vadd.f32 1.0, %v291_v48  ;;  %v294_v51 = vadd.f32 1.0, %v292_v49  ;;  %v307_v52 = vadd.f32 %v291_v48, %v640_v2  ;;  %v308_v55 = vadd.f32 %v292_v49, %v642_v3 }
  0x64   :  { %v283_v9 = vmax.f32 %v281_v56, -1e+30  ;;  %v284_v10 = vmax.f32 %v282_v57, -1e+30 }
  0x65   :  { %v295_v60 = vsel %vm287_vm2, %v293_v50, 1000.0  ;;  %v296_v63 = vsel %vm288_vm3, %v294_v51, 1000.0  ;;  %vm309_vm4 = vcmp.ge.f32.partialorder %v307_v52, 1.0  ;;  %vm310_vm5 = vcmp.ge.f32.partialorder %v308_v55, 1.0 }
  0x66   :  { %v299_v4 = vmin.f32 %v295_v60, %v297_v58  ;;  %v300_v5 = vmin.f32 %v296_v63, %v298_v59  ;;  %v517_v7 = vadd.f32 -1.0, %v307_v52  ;;  %v518_v8 = vadd.f32 -1.0, %v308_v55 }
  0x67   :  { %v303_v11 = vmax.f32 %v295_v60, %v297_v58  ;;  %v304_v12 = vmax.f32 %v296_v63, %v298_v59  ;;  %v319_v14 = vsel %vm309_vm4, -1000.0, %v307_v52  ;;  %v320_v15 = vsel %vm310_vm5, -1000.0, %v308_v55 }
  0x68   :  { %v313_v13 = vsel %vm309_vm4, %v517_v7, %v307_v52  ;;  %v314_v61 = vsel %vm310_vm5, %v518_v8, %v308_v55  ;;  %v301_v21 = vmin.f32 %v279_v0, %v299_v4  ;;  %v302_v22 = vmin.f32 %v280_v1, %v300_v5 }
  0x69   :  { %v315_v62 = vadd.f32 1.0, %v313_v13  ;;  %v316_v16 = vadd.f32 1.0, %v314_v61  ;;  %v329_v17 = vadd.f32 %v313_v13, %v640_v2  ;;  %v330_v20 = vadd.f32 %v314_v61, %v642_v3 }
  0x6a   :  { %v305_v23 = vmax.f32 %v283_v9, %v303_v11  ;;  %v306_v24 = vmax.f32 %v284_v10, %v304_v12  ;;  %v139_v60 = vsel %vm137_vm8, 1.0, %v623_v6  ;;  %v140_v0 = vsel %vm138_vm9, 1.0, %v623_v6 }
  0x6b   :  { %v317_v25 = vsel %vm309_vm4, %v315_v62, 1000.0  ;;  %v318_v26 = vsel %vm310_vm5, %v316_v16, 1000.0  ;;  %vm331_vm6 = vcmp.ge.f32.partialorder %v329_v17, 1.0  ;;  %vm332_vm7 = vcmp.ge.f32.partialorder %v330_v20, 1.0 }
  0x6c   :  { %v321_v27 = vmin.f32 %v317_v25, %v319_v14  ;;  %v322_v30 = vmin.f32 %v318_v26, %v320_v15  ;;  %v325_v31 = vmax.f32 %v317_v25, %v319_v14  ;;  %v326_v32 = vmax.f32 %v318_v26, %v320_v15 }
  0x6d   :  { %v519_v33 = vadd.f32 -1.0, %v329_v17  ;;  %v520_v34 = vadd.f32 -1.0, %v330_v20  ;;  %v341_v39 = vsel %vm331_vm6, -1000.0, %v329_v17  ;;  %v342_v40 = vsel %vm332_vm7, -1000.0, %v330_v20 }
  0x6e   :  { %v323_v41 = vmin.f32 %v301_v21, %v321_v27  ;;  %v324_v42 = vmin.f32 %v302_v22, %v322_v30  ;;  %v327_v43 = vmax.f32 %v305_v23, %v325_v31  ;;  %v328_v44 = vmax.f32 %v306_v24, %v326_v32 }
  0x6f   :  { %v335_v35 = vsel %vm331_vm6, %v519_v33, %v329_v17  ;;  %v336_v38 = vsel %vm332_vm7, %v520_v34, %v330_v20 }
  0x70   :  { %v337_v36 = vadd.f32 1.0, %v335_v35  ;;  %v338_v37 = vadd.f32 1.0, %v336_v38 }
  0x72   :  { %v339_v45 = vsel %vm331_vm6, %v337_v36, 1000.0  ;;  %v340_v46 = vsel %vm332_vm7, %v338_v37, 1000.0 }
  0x73   :  { %v343_v47 = vmin.f32 %v339_v45, %v341_v39  ;;  %v344_v48 = vmin.f32 %v340_v46, %v342_v40  ;;  %v347_v49 = vmax.f32 %v339_v45, %v341_v39  ;;  %v348_v50 = vmax.f32 %v340_v46, %v342_v40 }
  0x75   :  { %v345_v51 = vmin.f32 %v323_v41, %v343_v47  ;;  %v346_v52 = vmin.f32 %v324_v42, %v344_v48  ;;  %v349_v55 = vmax.f32 %v327_v43, %v347_v49  ;;  %v350_v56 = vmax.f32 %v328_v44, %v348_v50 }
  0x77   :  { %v521_v57 = vadd.f32 -0.999, %v345_v51  ;;  %v522_v58 = vadd.f32 -0.999, %v346_v52  ;;  %v355_v59 = vsub.f32 1.001, %v349_v55 }
  0x78   :  { %v356_v63 = vsub.f32 1.001, %v350_v56 }
  0x79   :  { %v353_v1 = vmax.f32 %v521_v57, 1.0  ;;  %v354_v4 = vmax.f32 %v522_v58, 1.0  ;;  %v357_v5 = vmax.f32 %v355_v59, 1.0 }
  0x7a   :  { %v358_v7 = vmax.f32 %v356_v63, 1.0 }
  0x7b   :  { %v359_v53 = vmul.f32 %v353_v1, %v708_v18  ;;  %v360_v8 = vmul.f32 %v354_v4, %v710_v19  ;;  %v363_v9 = vmul.f32 %v357_v5, %v139_v60 }
  0x7c   :  { %v364_v10 = vmul.f32 %v358_v7, %v140_v0 }
  0x7d   :  { %v361_v54 = vsub.f32 %v764_v28, %v359_v53  ;;  %v362_v11 = vsub.f32 %v766_v29, %v360_v8 }
  0x7f   :  { %v365_v12 = vadd.f32 %v363_v9, %v361_v54  ;;  %v366_v13 = vadd.f32 %v364_v10, %v362_v11 }
  0x81   :  { %v367_v61 = vadd.f32 %v365_v12, %v640_v2  ;;  %v368_v14 = vadd.f32 %v366_v13, %v642_v3 }
  0x83   :  { %vm369_vm10 = vcmp.ge.f32.partialorder %v367_v61, 1.0  ;;  %vm370_vm11 = vcmp.ge.f32.partialorder %v368_v14, 1.0  ;;  %v523_v15 = vadd.f32 -1.0, %v367_v61  ;;  %v524_v62 = vadd.f32 -1.0, %v368_v14 }
  0x84   :  { %v371_v18 = vsel %vm369_vm10, 8.0, %v623_v6  ;;  %v372_v19 = vsel %vm370_vm11, 8.0, %v623_v6 }
  0x85   :  { %v538_v16 = vpack.c.bf16 %v372_v19, %v371_v18  ;;  %v379_v17 = vsel %vm369_vm10, %v523_v15, %v367_v61  ;;  %v380_v20 = vsel %vm370_vm11, %v524_v62, %v368_v14 }
  0x86   :  { %v381_v28 = vadd.f32 %v379_v17, %v640_v2  ;;  %v382_v29 = vadd.f32 %v380_v20, %v642_v3 }
  0x87   :  { %539 = vst [vmem:[#allocation5] sm:$0xff] %v538_v16  }
  0x88   :  { %vm383_vm12 = vcmp.ge.f32.partialorder %v381_v28, 1.0  ;;  %vm384_vm13 = vcmp.ge.f32.partialorder %v382_v29, 1.0  ;;  %v525_v21 = vadd.f32 -1.0, %v381_v28  ;;  %v526_v22 = vadd.f32 -1.0, %v382_v29 }
  0x89   :  { %v385_v23 = vsel %vm383_vm12, 8.0, %v623_v6  ;;  %v386_v24 = vsel %vm384_vm13, 8.0, %v623_v6 }
  0x8a   :  { %v541_v25 = vpack.c.bf16 %v386_v24, %v385_v23  ;;  %v394_v26 = vsel %vm383_vm12, %v525_v21, %v381_v28  ;;  %v395_v27 = vsel %vm384_vm13, %v526_v22, %v382_v29 }
  0x8b   :  { %v396_v30 = vadd.f32 %v394_v26, %v640_v2  ;;  %v397_v31 = vadd.f32 %v395_v27, %v642_v3 }
  0x8c   :  { %542 = vst [vmem:[#allocation5 + $0x8] sm:$0xff] %v541_v25  }
  0x8d   :  { %vm398_vm14 = vcmp.ge.f32.partialorder %v396_v30, 1.0  ;;  %vm399_vm15 = vcmp.ge.f32.partialorder %v397_v31, 1.0  ;;  %v527_v32 = vadd.f32 -1.0, %v396_v30  ;;  %v528_v33 = vadd.f32 -1.0, %v397_v31 }
  0x8e   :  { %v400_v34 = vsel %vm398_vm14, 8.0, %v623_v6  ;;  %v401_v35 = vsel %vm399_vm15, 8.0, %v623_v6 }
  0x8f   :  { %v544_v38 = vpack.c.bf16 %v401_v35, %v400_v34  ;;  %v409_v36 = vsel %vm398_vm14, %v527_v32, %v396_v30  ;;  %v410_v37 = vsel %vm399_vm15, %v528_v33, %v397_v31 }
  0x90   :  { %v411_v39 = vadd.f32 %v409_v36, %v640_v2  ;;  %v412_v40 = vadd.f32 %v410_v37, %v642_v3 }
  0x91   :  { %545 = vst [vmem:[#allocation5 + $0x10] sm:$0xff] %v544_v38  }
  0x92   :  { %vm413_vm0 = vcmp.ge.f32.partialorder %v411_v39, 1.0  ;;  %vm414_vm1 = vcmp.ge.f32.partialorder %v412_v40, 1.0  ;;  %v529_v41 = vadd.f32 -1.0, %v411_v39  ;;  %v530_v42 = vadd.f32 -1.0, %v412_v40 }
  0x93   :  { %v415_v43 = vsel %vm413_vm0, 8.0, %v623_v6  ;;  %v416_v44 = vsel %vm414_vm1, 8.0, %v623_v6 }
  0x94   :  { %v547_v45 = vpack.c.bf16 %v416_v44, %v415_v43  ;;  %v424_v46 = vsel %vm413_vm0, %v529_v41, %v411_v39  ;;  %v425_v47 = vsel %vm414_vm1, %v530_v42, %v412_v40 }
  0x95   :  { %v426_v48 = vadd.f32 %v424_v46, %v640_v2  ;;  %v427_v49 = vadd.f32 %v425_v47, %v642_v3 }
  0x96   :  { %548 = vst [vmem:[#allocation5 + $0x18] sm:$0xff] %v547_v45  }
  0x97   :  { %vm428_vm2 = vcmp.ge.f32.partialorder %v426_v48, 1.0  ;;  %vm429_vm3 = vcmp.ge.f32.partialorder %v427_v49, 1.0  ;;  %v531_v50 = vadd.f32 -1.0, %v426_v48  ;;  %v532_v51 = vadd.f32 -1.0, %v427_v49 }
  0x98   :  { %v430_v52 = vsel %vm428_vm2, 8.0, %v623_v6  ;;  %v431_v55 = vsel %vm429_vm3, 8.0, %v623_v6 }
  0x99   :  { %v550_v56 = vpack.c.bf16 %v431_v55, %v430_v52  ;;  %v439_v57 = vsel %vm428_vm2, %v531_v50, %v426_v48  ;;  %v440_v58 = vsel %vm429_vm3, %v532_v51, %v427_v49 }
  0x9a   :  { %v441_v59 = vadd.f32 %v439_v57, %v640_v2  ;;  %v442_v60 = vadd.f32 %v440_v58, %v642_v3 }
  0x9b   :  { %551 = vst [vmem:[#allocation5 + $0x20] sm:$0xff] %v550_v56  }
  0x9c   :  { %vm443_vm4 = vcmp.ge.f32.partialorder %v441_v59, 1.0  ;;  %vm444_vm5 = vcmp.ge.f32.partialorder %v442_v60, 1.0  ;;  %v533_v63 = vadd.f32 -1.0, %v441_v59  ;;  %v534_v0 = vadd.f32 -1.0, %v442_v60 }
  0x9d   :  { %v445_v1 = vsel %vm443_vm4, 8.0, %v623_v6  ;;  %v446_v4 = vsel %vm444_vm5, 8.0, %v623_v6 }
  0x9e   :  { %v553_v5 = vpack.c.bf16 %v446_v4, %v445_v1  ;;  %v454_v7 = vsel %vm443_vm4, %v533_v63, %v441_v59  ;;  %v455_v53 = vsel %vm444_vm5, %v534_v0, %v442_v60 }
  0x9f   :  { %v456_v8 = vadd.f32 %v454_v7, %v640_v2  ;;  %v457_v9 = vadd.f32 %v455_v53, %v642_v3 }
  0xa0   :  { %554 = vst [vmem:[#allocation5 + $0x28] sm:$0xff] %v553_v5  }
  0xa1   :  { %vm458_vm6 = vcmp.ge.f32.partialorder %v456_v8, 1.0  ;;  %vm459_vm7 = vcmp.ge.f32.partialorder %v457_v9, 1.0  ;;  %v535_v10 = vadd.f32 -1.0, %v456_v8  ;;  %v536_v54 = vadd.f32 -1.0, %v457_v9 }
  0xa2   :  { %v460_v11 = vsel %vm458_vm6, 8.0, %v623_v6  ;;  %v461_v12 = vsel %vm459_vm7, 8.0, %v623_v6 }
  0xa3   :  { %v556_v13 = vpack.c.bf16 %v461_v12, %v460_v11  ;;  %v469_v61 = vsel %vm458_vm6, %v535_v10, %v456_v8  ;;  %v470_v14 = vsel %vm459_vm7, %v536_v54, %v457_v9 }
  0xa4   :  { %v471_v15 = vadd.f32 %v469_v61, %v640_v2  ;;  %v472_v62 = vadd.f32 %v470_v14, %v642_v3 }
  0xa5   :  { %557 = vst [vmem:[#allocation5 + $0x30] sm:$0xff] %v556_v13  }
  0xa6   :  { %vm473_vm8 = vcmp.ge.f32.partialorder %v471_v15, 1.0  ;;  %vm474_vm9 = vcmp.ge.f32.partialorder %v472_v62, 1.0 }
  0xa7   :  { %v475_v18 = vsel %vm473_vm8, 8.0, %v623_v6  ;;  %v476_v19 = vsel %vm474_vm9, 8.0, %v623_v6 }
  0xa8   :  { %v559_v16 = vpack.c.bf16 %v476_v19, %v475_v18 }
  0xaa   :  { %560 = vst [vmem:[#allocation5 + $0x38] sm:$0xff] %v559_v16  }
  0xab   :  { %494 = dma.vmem_to_hbm [thread:$0]  %s487_s13, 1024, %s489_s16, [#allocation4], %s625_s17, %s625_s17, %s626_s18  }
  0xac   :  { %618 = dma.done.wait [#allocation4], 1024  }
  0xad   :  { %619 = vsyncadd [#allocation4], 4294966272 }
  0xae   :  { %499 = vsyncpa [#allocation3], 1 }
  0xaf   :  { %500 = vsyncpa [#allocation4], 1 }

</bundles_post_ra>
